<compile_context>
chip_gen: v6e
topology: v6e:2x2x1
jax: 0.10.0
libtpu: 0.0.40
codegen_flags: <defaults>
</compile_context>

<pallas_src>
import jax
import jax.numpy as jnp
from jax.experimental import pallas as pl
from jax.experimental.pallas import tpu as pltpu


def _fcn_kernel(x_ref, w1t_ref, w2t_ref, o_ref):
    # fc1: (tile_m, K) @ (K, H) -> (tile_m, H), f32 accumulation on the MXU.
    h = jnp.dot(x_ref[...], w1t_ref[...], preferred_element_type=jnp.float32)
    # dropout(dp=0.0) is identity; nnPower(2) as one VPU multiply.
    h = h * h
    # fc2: (tile_m, H) @ (H, N) -> (tile_m, N).
    o_ref[...] = jnp.dot(
        h.astype(w2t_ref.dtype), w2t_ref[...], preferred_element_type=jnp.float32
    ).astype(o_ref.dtype)


def _sublane_multiple(dtype) -> int:
    # f32 -> 8, bf16 -> 16, int8/fp8 -> 32 (sub-32-bit packs along sublanes).
    itemsize = jnp.dtype(dtype).itemsize
    return max(8, 32 // itemsize)


def fcn_forward(x, w1, w2):
    """Equivalent of fcn.forward: ((x.flatten(1) @ w1.T) ** 2) @ w2.T."""
    B = x.shape[0]
    x2 = x.reshape(B, -1)
    K = x2.shape[1]
    H, K_w = w1.shape
    N, H_w = w2.shape
    assert K == K_w and H == H_w

    w1t = w1.T  # (K, H)
    w2t = w2.T  # (H, N)

    sub = _sublane_multiple(x2.dtype)
    itemsize = jnp.dtype(x2.dtype).itemsize

    # Batch tile sized so one x block is ~1 MiB (amortizes the ~0.35 us/step
    # grid overhead) while in/out double buffering stays well under the 16 MiB
    # v5e and 32 MiB v6e/v7x scoped-VMEM defaults.
    target_bytes = 1 << 20
    tile_m = max(sub, (target_bytes // max(1, K * itemsize)) // sub * sub)
    m_ceil = pl.cdiv(B, sub) * sub
    tile_m = min(tile_m, m_ceil)

    # Pad the batch up to a multiple of tile_m (zero rows -> zero outputs).
    m_pad = pl.cdiv(B, tile_m) * tile_m
    if m_pad != B:
        x2 = jnp.pad(x2, ((0, m_pad - B), (0, 0)))

    grid = (m_pad // tile_m,)

    out = pl.pallas_call(
        _fcn_kernel,
        out_shape=jax.ShapeDtypeStruct((m_pad, N), x2.dtype),
        grid_spec=pltpu.PrefetchScalarGridSpec(
            num_scalar_prefetch=0,
            grid=grid,
            in_specs=[
                pl.BlockSpec((tile_m, K), lambda i: (i, 0)),
                pl.BlockSpec((K, H), lambda i: (0, 0)),  # W1^T resident
                pl.BlockSpec((H, N), lambda i: (0, 0)),  # W2^T resident
            ],
            out_specs=pl.BlockSpec((tile_m, N), lambda i: (i, 0)),
        ),
        compiler_params=pltpu.CompilerParams(
            dimension_semantics=("parallel",),  # v7x: shard rows across 2 TCs
        ),
    )(x2, w1t, w2t)

    return out[:B]


if __name__ == "__main__":
    key = jax.random.PRNGKey(0)
    kx, k1, k2 = jax.random.split(key, 3)

    # NCHW-style input; flatten(1) gives in_size = 4*16*16 = 1024.
    B, C, Hs, Ws = 2, 4, 16, 16
    in_size = C * Hs * Ws
    h_size = 32
    out_size = 16

    x = jax.random.normal(kx, (B, C, Hs, Ws), dtype=jnp.float32)

    # Match the module's init: std = sqrt(0.25) / (2*h_size)^(1/3).
    std = 0.25 ** 0.5 / (2.0 * h_size) ** (1.0 / 3.0)
    w1 = (std * jax.random.normal(k1, (h_size, in_size))).astype(jnp.float32)
    w2 = (std * jax.random.normal(k2, (out_size, h_size))).astype(jnp.float32)

    # TODO(synk): dropout with dp>0 is not implemented (module default dp=0.0
    # / eval mode makes it an identity).
    y = fcn_forward(x, w1, w2)
    y = jax.block_until_ready(y)

    # Pure-JAX reference of the module forward.
    xf = x.reshape(B, -1)
    h = jnp.dot(xf, w1.T, preferred_element_type=jnp.float32)
    ref = jnp.dot(h * h, w2.T, preferred_element_type=jnp.float32).astype(x.dtype)

    assert y.shape == (B, out_size) and y.dtype == x.dtype
    assert jnp.allclose(y, ref, rtol=5e-3, atol=5e-3), float(
        jnp.max(jnp.abs(y - ref))
    )

    print("KERNEL_OK")
</pallas_src>

<mosaic_0001>
module attributes {stable_mosaic.version = 11 : i64} {
  func.func @_fcn_kernel(%arg0: i32, %arg1: memref<8x1024xf32, #tpu.memory_space<vmem>>, %arg2: memref<1024x32xf32, #tpu.memory_space<vmem>>, %arg3: memref<32x16xf32, #tpu.memory_space<vmem>>, %arg4: memref<8x16xf32, #tpu.memory_space<vmem>>) attributes {dimension_semantics = [#tpu.dimension_semantics<parallel>], iteration_bounds = array<i64: 1>, scalar_prefetch = 0 : i64, scratch_operands = 0 : i64, tpu.core_type = #tpu.core_type<tc>, window_params = [{transform_indices = @transform_0, window_bounds = array<i64: 8, 1024>}, {pipeline_mode = #tpu.pipeline_mode<synchronous>, transform_indices = @transform_1, window_bounds = array<i64: 1024, 32>}, {pipeline_mode = #tpu.pipeline_mode<synchronous>, transform_indices = @transform_2, window_bounds = array<i64: 32, 16>}, {transform_indices = @transform_3, window_bounds = array<i64: 8, 16>}]} {
    %c0 = arith.constant 0 : index
    %c0_0 = arith.constant 0 : index
    %0 = vector.load %arg1[%c0, %c0_0] : memref<8x1024xf32, #tpu.memory_space<vmem>>, vector<8x1024xf32>
    %c0_1 = arith.constant 0 : index
    %c0_2 = arith.constant 0 : index
    %1 = vector.load %arg2[%c0_1, %c0_2] : memref<1024x32xf32, #tpu.memory_space<vmem>>, vector<1024x32xf32>
    %cst = arith.constant dense<0.000000e+00> : vector<8x32xf32>
    %2 = tpu.matmul %0, %1, %cst {dimension_numbers = #tpu.dot_dimension_numbers<[1], [0], [0], [1], [0, 0, 1, 1], [], []>} : vector<8x1024xf32>, vector<1024x32xf32>, vector<8x32xf32> -> vector<8x32xf32>
    %3 = arith.mulf %2, %2 : vector<8x32xf32>
    %c0_3 = arith.constant 0 : index
    %c0_4 = arith.constant 0 : index
    %4 = vector.load %arg3[%c0_3, %c0_4] : memref<32x16xf32, #tpu.memory_space<vmem>>, vector<32x16xf32>
    %cst_5 = arith.constant dense<0.000000e+00> : vector<8x16xf32>
    %5 = tpu.matmul %3, %4, %cst_5 {dimension_numbers = #tpu.dot_dimension_numbers<[1], [0], [0], [1], [0, 0, 1, 1], [], []>} : vector<8x32xf32>, vector<32x16xf32>, vector<8x16xf32> -> vector<8x16xf32>
    %c0_6 = arith.constant 0 : index
    %c0_7 = arith.constant 0 : index
    %6 = vector.load %arg4[%c0_6, %c0_7] : memref<8x16xf32, #tpu.memory_space<vmem>>, vector<8x16xf32>
    tpu.vector_store %arg4[%c0_6, %c0_7], %5 {strides = array<i32>} : memref<8x16xf32, #tpu.memory_space<vmem>>, vector<8x16xf32>,
    return
  }
  func.func @transform_0(%arg0: i32) -> (i32, i32) {
    %c0_i32 = arith.constant 0 : i32
    %c0_i32_0 = arith.constant 0 : i32
    return %arg0, %c0_i32 : i32, i32
  }
  func.func @transform_1(%arg0: i32) -> (i32, i32) {
    %c0_i32 = arith.constant 0 : i32
    %c0_i32_0 = arith.constant 0 : i32
    %c0_i32_1 = arith.constant 0 : i32
    return %c0_i32, %c0_i32_0 : i32, i32
  }
  func.func @transform_2(%arg0: i32) -> (i32, i32) {
    %c0_i32 = arith.constant 0 : i32
    %c0_i32_0 = arith.constant 0 : i32
    %c0_i32_1 = arith.constant 0 : i32
    return %c0_i32, %c0_i32_0 : i32, i32
  }
  func.func @transform_3(%arg0: i32) -> (i32, i32) {
    %c0_i32 = arith.constant 0 : i32
    %c0_i32_0 = arith.constant 0 : i32
    return %arg0, %c0_i32 : i32, i32
  }
}

</mosaic_0001>

<bundles_post_ra>
// kernel: tpu_custom_call.1
= control target key start
LH: loop header
LB: loop body
LE: loop exit
PB: predicated region body
PF: predicated region fallthrough
CT: control target
= control target key end

     0   :  { %s1154_s0 = inlined_call_operand.vmem [shape: f32[8,1024], index: 0, kind: input, shape index: {}]   ;;  %s1155_s1 = inlined_call_operand.vmem [shape: f32[1024,32], index: 1, kind: input, shape index: {}]   ;;  %s1156_s2 = inlined_call_operand.vmem [shape: f32[32,16], index: 2, kind: input, shape index: {}]   ;;  %s1157_s3 = inlined_call_operand.hbm [shape: f32[8,16], index: 3, kind: output, shape index: {}]  }
   0x1   :  { %v54_v0 = vld [vmem:[%s1155_s1 + $0xf8] sm:$0xff]  ;;  %v53_v4 = vld [vmem:[%s1155_s1 + $0xf0] sm:$0xff]  ;;  %v52_v8 = vld [vmem:[%s1155_s1 + $0xe8] sm:$0xff] }
   0x2   :  { %v86_v1 = vld [vmem:[%s1155_s1 + $0x1f8] sm:$0xff]  ;;  %527 = vmatprep.subr.mxu0 %v54_v0  ;;  %v85_v5 = vld [vmem:[%s1155_s1 + $0x1f0] sm:$0xff]  ;;  %v84_v9 = vld [vmem:[%s1155_s1 + $0x1e8] sm:$0xff] }
   0x3   :  { %v38_v2 = vld [vmem:[%s1155_s1 + $0x78] sm:$0xff]  ;;  %562 = vmatprep.subr.mxu1 %v86_v1  ;;  %v37_v6 = vld [vmem:[%s1155_s1 + $0x70] sm:$0xff]  ;;  %v36_v10 = vld [vmem:[%s1155_s1 + $0x68] sm:$0xff] }
   0x4   :  { %v70_v3 = vld [vmem:[%s1155_s1 + $0x178] sm:$0xff]  ;;  %528 = vmatpush3.msra.mxu0 %v38_v2  ;;  %v69_v7 = vld [vmem:[%s1155_s1 + $0x170] sm:$0xff]  ;;  %v68_v11 = vld [vmem:[%s1155_s1 + $0x168] sm:$0xff] }
   0x5   :  { %563 = vmatpush3.msra.mxu1 %v70_v3  ;;  %529 = vmatprep.subr.mxu0 %v53_v4  ;;  %v51_v12 = vld [vmem:[%s1155_s1 + $0xe0] sm:$0xff]  ;;  %v50_v16 = vld [vmem:[%s1155_s1 + $0xd8] sm:$0xff]  ;;  %v49_v20 = vld [vmem:[%s1155_s1 + $0xd0] sm:$0xff] }
   0x6   :  { %564 = vmatprep.subr.mxu1 %v85_v5  ;;  %530 = vmatpush3.msra.mxu0 %v37_v6  ;;  %v83_v13 = vld [vmem:[%s1155_s1 + $0x1e0] sm:$0xff]  ;;  %v82_v17 = vld [vmem:[%s1155_s1 + $0x1d8] sm:$0xff]  ;;  %v81_v21 = vld [vmem:[%s1155_s1 + $0x1d0] sm:$0xff] }
   0x7   :  { %565 = vmatpush3.msra.mxu1 %v69_v7  ;;  %531 = vmatprep.subr.mxu0 %v52_v8  ;;  %v35_v14 = vld [vmem:[%s1155_s1 + $0x60] sm:$0xff]  ;;  %v34_v18 = vld [vmem:[%s1155_s1 + $0x58] sm:$0xff]  ;;  %v33_v22 = vld [vmem:[%s1155_s1 + $0x50] sm:$0xff] }
   0x8   :  { %566 = vmatprep.subr.mxu1 %v84_v9  ;;  %v67_v15 = vld [vmem:[%s1155_s1 + $0x160] sm:$0xff]  ;;  %532 = vmatpush3.msra.mxu0 %v36_v10  ;;  %v66_v19 = vld [vmem:[%s1155_s1 + $0x158] sm:$0xff]  ;;  %v65_v23 = vld [vmem:[%s1155_s1 + $0x150] sm:$0xff] }
   0x9   :  { %567 = vmatpush3.msra.mxu1 %v68_v11  ;;  %533 = vmatprep.subr.mxu0 %v51_v12  ;;  %v48_v24 = vld [vmem:[%s1155_s1 + $0xc8] sm:$0xff]  ;;  %v47_v28 = vld [vmem:[%s1155_s1 + $0xc0] sm:$0xff]  ;;  %v46_v32 = vld [vmem:[%s1155_s1 + $0xb8] sm:$0xff] }
   0xa   :  { %568 = vmatprep.subr.mxu1 %v83_v13  ;;  %534 = vmatpush3.msra.mxu0 %v35_v14  ;;  %v80_v25 = vld [vmem:[%s1155_s1 + $0x1c8] sm:$0xff]  ;;  %v79_v29 = vld [vmem:[%s1155_s1 + $0x1c0] sm:$0xff]  ;;  %v78_v33 = vld [vmem:[%s1155_s1 + $0x1b8] sm:$0xff] }
   0xb   :  { %569 = vmatpush3.msra.mxu1 %v67_v15  ;;  %535 = vmatprep.subr.mxu0 %v50_v16  ;;  %v32_v26 = vld [vmem:[%s1155_s1 + $0x48] sm:$0xff]  ;;  %v31_v30 = vld [vmem:[%s1155_s1 + $0x40] sm:$0xff]  ;;  %v30_v34 = vld [vmem:[%s1155_s1 + $0x38] sm:$0xff] }
   0xc   :  { %570 = vmatprep.subr.mxu1 %v82_v17  ;;  %536 = vmatpush3.msra.mxu0 %v34_v18  ;;  %v64_v27 = vld [vmem:[%s1155_s1 + $0x148] sm:$0xff]  ;;  %v63_v31 = vld [vmem:[%s1155_s1 + $0x140] sm:$0xff]  ;;  %v62_v35 = vld [vmem:[%s1155_s1 + $0x138] sm:$0xff] }
   0xd   :  { %571 = vmatpush3.msra.mxu1 %v66_v19  ;;  %537 = vmatprep.subr.mxu0 %v49_v20  ;;  %v45_v36 = vld [vmem:[%s1155_s1 + $0xb0] sm:$0xff]  ;;  %v44_v40 = vld [vmem:[%s1155_s1 + $0xa8] sm:$0xff]  ;;  %v43_v44 = vld [vmem:[%s1155_s1 + $0xa0] sm:$0xff] }
   0xe   :  { %572 = vmatprep.subr.mxu1 %v81_v21  ;;  %538 = vmatpush3.msra.mxu0 %v33_v22  ;;  %v77_v37 = vld [vmem:[%s1155_s1 + $0x1b0] sm:$0xff]  ;;  %v76_v41 = vld [vmem:[%s1155_s1 + $0x1a8] sm:$0xff]  ;;  %v75_v45 = vld [vmem:[%s1155_s1 + $0x1a0] sm:$0xff] }
   0xf   :  { %573 = vmatpush3.msra.mxu1 %v65_v23  ;;  %539 = vmatprep.subr.mxu0 %v48_v24  ;;  %v29_v38 = vld [vmem:[%s1155_s1 + $0x30] sm:$0xff]  ;;  %v28_v42 = vld [vmem:[%s1155_s1 + $0x28] sm:$0xff]  ;;  %v27_v46 = vld [vmem:[%s1155_s1 + $0x20] sm:$0xff] }
  0x10   :  { %574 = vmatprep.subr.mxu1 %v80_v25  ;;  %540 = vmatpush3.msra.mxu0 %v32_v26  ;;  %v61_v39 = vld [vmem:[%s1155_s1 + $0x130] sm:$0xff]  ;;  %v60_v43 = vld [vmem:[%s1155_s1 + $0x128] sm:$0xff]  ;;  %v59_v47 = vld [vmem:[%s1155_s1 + $0x120] sm:$0xff] }
  0x11   :  { %575 = vmatpush3.msra.mxu1 %v64_v27  ;;  %541 = vmatprep.subr.mxu0 %v47_v28  ;;  %v42_v48 = vld [vmem:[%s1155_s1 + $0x98] sm:$0xff]  ;;  %v41_v52 = vld [vmem:[%s1155_s1 + $0x90] sm:$0xff]  ;;  %v40_v56 = vld [vmem:[%s1155_s1 + $0x88] sm:$0xff] }
  0x12   :  { %576 = vmatprep.subr.mxu1 %v79_v29  ;;  %542 = vmatpush3.msra.mxu0 %v31_v30  ;;  %v74_v49 = vld [vmem:[%s1155_s1 + $0x198] sm:$0xff]  ;;  %v73_v53 = vld [vmem:[%s1155_s1 + $0x190] sm:$0xff]  ;;  %v72_v57 = vld [vmem:[%s1155_s1 + $0x188] sm:$0xff] }
  0x13   :  { %577 = vmatpush3.msra.mxu1 %v63_v31  ;;  %543 = vmatprep.subr.mxu0 %v46_v32  ;;  %v26_v50 = vld [vmem:[%s1155_s1 + $0x18] sm:$0xff]  ;;  %v25_v54 = vld [vmem:[%s1155_s1 + $0x10] sm:$0xff]  ;;  %v24_v58 = vld [vmem:[%s1155_s1 + $0x8] sm:$0xff] }
  0x14   :  { %578 = vmatprep.subr.mxu1 %v78_v33  ;;  %544 = vmatpush3.msra.mxu0 %v30_v34  ;;  %v58_v51 = vld [vmem:[%s1155_s1 + $0x118] sm:$0xff]  ;;  %v57_v55 = vld [vmem:[%s1155_s1 + $0x110] sm:$0xff]  ;;  %v56_v59 = vld [vmem:[%s1155_s1 + $0x108] sm:$0xff] }
  0x15   :  { %579 = vmatpush3.msra.mxu1 %v62_v35  ;;  %545 = vmatprep.subr.mxu0 %v45_v36  ;;  %v39_v60 = vld [vmem:[%s1155_s1 + $0x80] sm:$0xff]  ;;  %v16_v63 = vld [vmem:[%s1154_s0 + $0x8] sm:$0xff]  ;;  %v18_v1 = vld [vmem:[%s1154_s0 + $0x18] sm:$0xff] }
  0x16   :  { %580 = vmatprep.subr.mxu1 %v77_v37  ;;  %546 = vmatpush3.msra.mxu0 %v29_v38  ;;  %v71_v61 = vld [vmem:[%s1155_s1 + $0x180] sm:$0xff]  ;;  %v17_v3 = vld [vmem:[%s1154_s0 + $0x10] sm:$0xff]  ;;  %v118_v4 = vld [vmem:[%s1155_s1 + $0x2f8] sm:$0xff] }
  0x17   :  { %581 = vmatpush3.msra.mxu1 %v61_v39  ;;  %547 = vmatprep.subr.mxu0 %v44_v40  ;;  %v23_v62 = vld [vmem:[%s1155_s1] sm:$0xff]  ;;  %v150_v5 = vld [vmem:[%s1155_s1 + $0x3f8] sm:$0xff]  ;;  %v117_v8 = vld [vmem:[%s1155_s1 + $0x2f0] sm:$0xff] }
  0x18   :  { %582 = vmatprep.subr.mxu1 %v76_v41  ;;  %548 = vmatpush3.msra.mxu0 %v28_v42  ;;  %v55_v0 = vld [vmem:[%s1155_s1 + $0x100] sm:$0xff]  ;;  %v102_v6 = vld [vmem:[%s1155_s1 + $0x278] sm:$0xff]  ;;  %v149_v9 = vld [vmem:[%s1155_s1 + $0x3f0] sm:$0xff] }
  0x19   :  { %583 = vmatpush3.msra.mxu1 %v60_v43  ;;  %549 = vmatprep.subr.mxu0 %v43_v44  ;;  %v15_v2 = vld [vmem:[%s1154_s0] sm:$0xff]  ;;  %v134_v7 = vld [vmem:[%s1155_s1 + $0x378] sm:$0xff]  ;;  %v101_v10 = vld [vmem:[%s1155_s1 + $0x270] sm:$0xff] }
  0x1a   :  { %584 = vmatprep.subr.mxu1 %v75_v45  ;;  %550 = vmatpush3.msra.mxu0 %v27_v46  ;;  %v133_v11 = vld [vmem:[%s1155_s1 + $0x370] sm:$0xff]  ;;  %v116_v12 = vld [vmem:[%s1155_s1 + $0x2e8] sm:$0xff]  ;;  %v115_v16 = vld [vmem:[%s1155_s1 + $0x2e0] sm:$0xff] }
  0x1b   :  { %585 = vmatpush3.msra.mxu1 %v59_v47  ;;  %551 = vmatprep.subr.mxu0 %v42_v48  ;;  %v148_v13 = vld [vmem:[%s1155_s1 + $0x3e8] sm:$0xff]  ;;  %v147_v17 = vld [vmem:[%s1155_s1 + $0x3e0] sm:$0xff]  ;;  %v114_v20 = vld [vmem:[%s1155_s1 + $0x2d8] sm:$0xff] }
  0x1c   :  { %586 = vmatprep.subr.mxu1 %v74_v49  ;;  %552 = vmatpush3.msra.mxu0 %v26_v50  ;;  %v100_v14 = vld [vmem:[%s1155_s1 + $0x268] sm:$0xff]  ;;  %v99_v18 = vld [vmem:[%s1155_s1 + $0x260] sm:$0xff]  ;;  %v146_v21 = vld [vmem:[%s1155_s1 + $0x3d8] sm:$0xff] }
  0x1d   :  { %587 = vmatpush3.msra.mxu1 %v58_v51  ;;  %553 = vmatprep.subr.mxu0 %v41_v52  ;;  %v132_v15 = vld [vmem:[%s1155_s1 + $0x368] sm:$0xff]  ;;  %v131_v19 = vld [vmem:[%s1155_s1 + $0x360] sm:$0xff]  ;;  %v98_v22 = vld [vmem:[%s1155_s1 + $0x258] sm:$0xff] }
  0x1e   :  { %588 = vmatprep.subr.mxu1 %v73_v53  ;;  %554 = vmatpush3.msra.mxu0 %v25_v54  ;;  %v130_v23 = vld [vmem:[%s1155_s1 + $0x358] sm:$0xff]  ;;  %v113_v24 = vld [vmem:[%s1155_s1 + $0x2d0] sm:$0xff]  ;;  %v112_v28 = vld [vmem:[%s1155_s1 + $0x2c8] sm:$0xff] }
  0x1f   :  { %589 = vmatpush3.msra.mxu1 %v57_v55  ;;  %555 = vmatprep.subr.mxu0 %v40_v56  ;;  %v145_v25 = vld [vmem:[%s1155_s1 + $0x3d0] sm:$0xff]  ;;  %v144_v29 = vld [vmem:[%s1155_s1 + $0x3c8] sm:$0xff] }
  0x20   :  { %590 = vmatprep.subr.mxu1 %v72_v57  ;;  %556 = vmatpush3.msra.mxu0 %v24_v58  ;;  %v97_v26 = vld [vmem:[%s1155_s1 + $0x250] sm:$0xff]  ;;  %v96_v30 = vld [vmem:[%s1155_s1 + $0x248] sm:$0xff] }
  0x21   :  { %591 = vmatpush3.msra.mxu1 %v56_v59  ;;  %557 = vmatprep.subr.mxu0 %v39_v60  ;;  %v129_v27 = vld [vmem:[%s1155_s1 + $0x350] sm:$0xff]  ;;  %v128_v31 = vld [vmem:[%s1155_s1 + $0x348] sm:$0xff] }
  0x22   :  { %592 = vmatprep.subr.mxu1 %v71_v61  ;;  %558 = vmatpush3.msra.mxu0 %v23_v62 }
  0x23   :  { %215 = vmatprep.mubr.f32.mxu0 %v16_v63  ;;  %593 = vmatpush3.msra.mxu1 %v55_v0 }
  0x24   :  { %285 = vmatprep.mubr.f32.mxu1 %v18_v1  ;;  %216 = vmatmul.mubr.f32.vlgmr.msra.gmra.mxu0 %v15_v2 }
  0x25   :  { %286 = vmatmul.mubr.f32.vlgmr.msra.gmra.mxu1 %v17_v3  ;;  %597 = vmatprep.subr.mxu0 %v118_v4 }
  0x26   :  { %632 = vmatprep.subr.mxu1 %v150_v5  ;;  %598 = vmatpush3.msra.mxu0 %v102_v6 }
  0x27   :  { %633 = vmatpush3.msra.mxu1 %v134_v7  ;;  %599 = vmatprep.subr.mxu0 %v117_v8 }
  0x28   :  { %634 = vmatprep.subr.mxu1 %v149_v9  ;;  %600 = vmatpush3.msra.mxu0 %v101_v10 }
  0x29   :  { %635 = vmatpush3.msra.mxu1 %v133_v11  ;;  %601 = vmatprep.subr.mxu0 %v116_v12 }
  0x2a   :  { %636 = vmatprep.subr.mxu1 %v148_v13  ;;  %602 = vmatpush3.msra.mxu0 %v100_v14 }
  0x2b   :  { %637 = vmatpush3.msra.mxu1 %v132_v15  ;;  %603 = vmatprep.subr.mxu0 %v115_v16 }
  0x2c   :  { %638 = vmatprep.subr.mxu1 %v147_v17  ;;  %604 = vmatpush3.msra.mxu0 %v99_v18 }
  0x2d   :  { %639 = vmatpush3.msra.mxu1 %v131_v19  ;;  %605 = vmatprep.subr.mxu0 %v114_v20 }
  0x2e   :  { %640 = vmatprep.subr.mxu1 %v146_v21  ;;  %606 = vmatpush3.msra.mxu0 %v98_v22 }
  0x2f   :  { %641 = vmatpush3.msra.mxu1 %v130_v23  ;;  %607 = vmatprep.subr.mxu0 %v113_v24 }
  0x30   :  { %642 = vmatprep.subr.mxu1 %v145_v25 }
  0x31   :  { %8 = vsyncpa [#allocation3], 0  ;;  %608 = vmatpush3.msra.mxu0 %v97_v26  ;;  %643 = vmatpush3.msra.mxu1 %v129_v27  ;;  %v111_v32 = vld [vmem:[%s1155_s1 + $0x2c0] sm:$0xff]  ;;  %v110_v36 = vld [vmem:[%s1155_s1 + $0x2b8] sm:$0xff]  ;;  %v708_v8 = vmov 0.0   ;;  %vm709_vm0 = vmmov 0  }
  0x32   :  { %v143_v33 = vld [vmem:[%s1155_s1 + $0x3c0] sm:$0xff]  ;;  %609 = vmatprep.subr.mxu0 %v112_v28  ;;  %644 = vmatprep.subr.mxu1 %v144_v29  ;;  %v142_v37 = vld [vmem:[%s1155_s1 + $0x3b8] sm:$0xff]  ;;  %v109_v40 = vld [vmem:[%s1155_s1 + $0x2b0] sm:$0xff]  ;;  %vm436_vm1 = vcmask 261120   ;;  %vm510_vm2 = vcmask 130048  }
  0x33   :  { %v95_v34 = vld [vmem:[%s1155_s1 + $0x240] sm:$0xff]  ;;  %610 = vmatpush3.msra.mxu0 %v96_v30  ;;  %645 = vmatpush3.msra.mxu1 %v128_v31  ;;  %v94_v38 = vld [vmem:[%s1155_s1 + $0x238] sm:$0xff]  ;;  %v141_v41 = vld [vmem:[%s1155_s1 + $0x3b0] sm:$0xff] }
  0x34   :  { %v127_v35 = vld [vmem:[%s1155_s1 + $0x340] sm:$0xff]  ;;  %611 = vmatprep.subr.mxu0 %v111_v32  ;;  %646 = vmatprep.subr.mxu1 %v143_v33  ;;  %v126_v39 = vld [vmem:[%s1155_s1 + $0x338] sm:$0xff]  ;;  %v93_v42 = vld [vmem:[%s1155_s1 + $0x230] sm:$0xff] }
  0x35   :  { %612 = vmatpush3.msra.mxu0 %v95_v34  ;;  %647 = vmatpush3.msra.mxu1 %v127_v35  ;;  %v125_v43 = vld [vmem:[%s1155_s1 + $0x330] sm:$0xff]  ;;  %v108_v44 = vld [vmem:[%s1155_s1 + $0x2a8] sm:$0xff]  ;;  %v107_v48 = vld [vmem:[%s1155_s1 + $0x2a0] sm:$0xff] }
  0x36   :  { %613 = vmatprep.subr.mxu0 %v110_v36  ;;  %648 = vmatprep.subr.mxu1 %v142_v37  ;;  %v140_v45 = vld [vmem:[%s1155_s1 + $0x3a8] sm:$0xff]  ;;  %v139_v49 = vld [vmem:[%s1155_s1 + $0x3a0] sm:$0xff]  ;;  %v106_v52 = vld [vmem:[%s1155_s1 + $0x298] sm:$0xff] }
  0x37   :  { %614 = vmatpush3.msra.mxu0 %v94_v38  ;;  %649 = vmatpush3.msra.mxu1 %v126_v39  ;;  %v92_v46 = vld [vmem:[%s1155_s1 + $0x228] sm:$0xff]  ;;  %v91_v50 = vld [vmem:[%s1155_s1 + $0x220] sm:$0xff]  ;;  %v138_v53 = vld [vmem:[%s1155_s1 + $0x398] sm:$0xff] }
  0x38   :  { %615 = vmatprep.subr.mxu0 %v109_v40  ;;  %650 = vmatprep.subr.mxu1 %v141_v41  ;;  %v124_v47 = vld [vmem:[%s1155_s1 + $0x328] sm:$0xff]  ;;  %v123_v51 = vld [vmem:[%s1155_s1 + $0x320] sm:$0xff]  ;;  %v90_v54 = vld [vmem:[%s1155_s1 + $0x218] sm:$0xff] }
  0x39   :  { %616 = vmatpush3.msra.mxu0 %v93_v42  ;;  %651 = vmatpush3.msra.mxu1 %v125_v43  ;;  %v122_v55 = vld [vmem:[%s1155_s1 + $0x318] sm:$0xff]  ;;  %v105_v56 = vld [vmem:[%s1155_s1 + $0x290] sm:$0xff]  ;;  %v104_v60 = vld [vmem:[%s1155_s1 + $0x288] sm:$0xff] }
  0x3a   :  { %617 = vmatprep.subr.mxu0 %v108_v44  ;;  %652 = vmatprep.subr.mxu1 %v140_v45  ;;  %v137_v57 = vld [vmem:[%s1155_s1 + $0x390] sm:$0xff]  ;;  %v136_v61 = vld [vmem:[%s1155_s1 + $0x388] sm:$0xff]  ;;  %v103_v0 = vld [vmem:[%s1155_s1 + $0x280] sm:$0xff] }
  0x3b   :  { %618 = vmatpush3.msra.mxu0 %v92_v46  ;;  %653 = vmatpush3.msra.mxu1 %v124_v47  ;;  %v89_v58 = vld [vmem:[%s1155_s1 + $0x210] sm:$0xff]  ;;  %v88_v62 = vld [vmem:[%s1155_s1 + $0x208] sm:$0xff]  ;;  %v135_v1 = vld [vmem:[%s1155_s1 + $0x380] sm:$0xff] }
  0x3c   :  { %619 = vmatprep.subr.mxu0 %v107_v48  ;;  %654 = vmatprep.subr.mxu1 %v139_v49  ;;  %v121_v59 = vld [vmem:[%s1155_s1 + $0x310] sm:$0xff]  ;;  %v120_v63 = vld [vmem:[%s1155_s1 + $0x308] sm:$0xff]  ;;  %v87_v2 = vld [vmem:[%s1155_s1 + $0x200] sm:$0xff] }
  0x3d   :  { %620 = vmatpush3.msra.mxu0 %v91_v50  ;;  %655 = vmatpush3.msra.mxu1 %v123_v51  ;;  %v20_v3 = vld [vmem:[%s1154_s0 + $0x28] sm:$0xff]  ;;  %v119_v4 = vld [vmem:[%s1155_s1 + $0x300] sm:$0xff]  ;;  %v22_v5 = vld [vmem:[%s1154_s0 + $0x38] sm:$0xff] }
  0x3e   :  { %621 = vmatprep.subr.mxu0 %v106_v52  ;;  %656 = vmatprep.subr.mxu1 %v138_v53  ;;  %v19_v6 = vld [vmem:[%s1154_s0 + $0x20] sm:$0xff]  ;;  %v21_v7 = vld [vmem:[%s1154_s0 + $0x30] sm:$0xff]  ;;  %v435_v9 = vld [vmem:[%s1156_s2 + $0x18] sm:$0xff] }
  0x3f   :  { %622 = vmatpush3.msra.mxu0 %v90_v54  ;;  %657 = vmatpush3.msra.mxu1 %v122_v55  ;;  %v434_v10 = vld [vmem:[%s1156_s2 + $0x10] sm:$0xff]  ;;  %v433_v11 = vld [vmem:[%s1156_s2 + $0x8] sm:$0xff]  ;;  %v432_v12 = vld [vmem:[%s1156_s2] sm:$0xff]  ;;  %s710_s2 = smov [#allocation2]  }
  0x40   :  { %623 = vmatprep.subr.mxu0 %v105_v56  ;;  %658 = vmatprep.subr.mxu1 %v137_v57  ;;  %s518_s20 = sshll.u32 %s710_s2, 4  ;;  %s519_s20 = int_to_ptr.vmem [resolvable:$true] %s518_s20 }
  0x41   :  { %624 = vmatpush3.msra.mxu0 %v89_v58  ;;  %659 = vmatpush3.msra.mxu1 %v121_v59  ;;  %s686_s21 = scalar_lea.vmem %s519_s20, 128  ;;  %p691_p1 = scmp.lt.s32.totalorder %s519_s20, %s519_s20 }
  0x42   :  { %625 = vmatprep.subr.mxu0 %v104_v60  ;;  %660 = vmatprep.subr.mxu1 %v136_v61  ;;  %p687_p0 = scmp.ne.s32.totalorder %s519_s20, %s686_s21  ;;  %p692_p2 = scmp.lt.s32.totalorder %s686_s21, %s686_s21 }
  0x43   :  { %626 = vmatpush3.msra.mxu0 %v88_v62  ;;  %661 = vmatpush3.msra.mxu1 %v120_v63 }
  0x44   :  { %627 = vmatprep.subr.mxu0 %v103_v0  ;;  %662 = vmatprep.subr.mxu1 %v135_v1  ;;  %p693_p3 = por %p692_p2, %p691_p1 }
  0x45   :  { %628 = vmatpush3.msra.mxu0 %v87_v2  ;;  %355 = vmatprep.mubr.f32.mxu0 %v20_v3 }
  0x46   :  { %663 = vmatpush3.msra.mxu1 %v119_v4  ;;  %425 = vmatprep.mubr.f32.mxu1 %v22_v5  ;;  %p694_p4 = pnand %p693_p3, %p687_p0 }
  0x47   :  { %356 = vmatmul.mubr.f32.vlgmr.msra.gmra.mxu0 %v19_v6  ;;  %426 = vmatmul.mubr.f32.vlgmr.msra.gmra.mxu1 %v21_v7 }
  0x48   :  { %672 = vmatprep.subr.mxu0 %v708_v8  ;;  %680 = vmatprep.mubr.msk.f32.mxu0 %vm709_vm0, %v708_v8 }
  0x49   :  { %673 = vmatpush3.msra.mxu0 %v435_v9 }
  0x4a   :  { %674 = vmatprep.subr.mxu0 %v708_v8 }
  0x4b   :  { %675 = vmatpush3.msra.mxu0 %v434_v10 }
  0x4c   :  { %676 = vmatprep.subr.mxu0 %v708_v8 }
  0x4d   :  { %677 = vmatpush3.msra.mxu0 %v433_v11 }
  0x4e   :  { %678 = vmatprep.subr.mxu0 %v708_v8 }
  0x4f   :  { %679 = vmatpush3.msra.mxu0 %v432_v12 }
  0xe4   :  { %v559_v13 = vpop.f32.mrf.mxu0 }
  0xe5   :  { %v594_v14 = vpop.f32.mrf.mxu1 }
  0xe6   :  { %v560_v15 = vpop.f32.mrf.mxu0 }
  0xe7   :  { %v595_v16 = vpop.f32.mrf.mxu1  ;;  %v561_v17 = vadd.f32 %v560_v15, %v559_v13 }
  0xe8   :  { %v596_v18 = vadd.f32 %v595_v16, %v594_v14 }
  0xea   :  { %v288_v23 = vadd.f32 %v596_v18, %v561_v17 }
 0x107   :  { %v629_v19 = vpop.f32.mrf.mxu0  ;;  %v664_v20 = vpop.f32.mrf.mxu1 }
 0x109   :  { %v630_v21 = vpop.f32.mrf.mxu0  ;;  %v665_v22 = vpop.f32.mrf.mxu1 }
 0x10a   :  { %v631_v24 = vadd.f32 %v630_v21, %v629_v19  ;;  %v666_v26 = vadd.f32 %v665_v22, %v664_v20 }
 0x10c   :  { %v358_v25 = vadd.f32 %v631_v24, %v288_v23 }
 0x10e   :  { %v428_v27 = vadd.f32 %v666_v26, %v358_v25 }
 0x110   :  { %v431_v28 = vmul.f32 %v428_v27, %v428_v27 }
 0x112   :  { %681 = vmatmul.mubr.msk.f32.vlgmr.msra.gmra.mxu0 %vm436_vm1, %v431_v28 }
 0x1d2   :  { %v506_v29 = vpop.f32.mrf.mxu0 }
 0x1d3   :  { %511 = vst.msk [vmem:[#allocation2] sm:$0xff] %vm510_vm2, %v506_v29 }
 0x1d4   :  { %v682_v30 = vpop.f32.mrf.mxu0 }
 0x1d5   :  { %697 = shalt.err (!%p694_p4)
}
 0x1d6   :  { %521 = dma.vmem_to_hbm [thread:$0]  %s519_s20, 128, %s1157_s3, [#allocation3]  }
 0x1d7   :  { %706 = dma.done.wait [#allocation3], 128  }
 0x1d8   :  { %707 = vsyncadd [#allocation3], 4294967168 }
 0x1d9   :  { %525 = vsyncpa [#allocation3], 1 }

</bundles_post_ra>
